<compile_context>
chip_gen: v6e
topology: v6e:2x2x1
jax: 0.10.0
libtpu: 0.0.40
codegen_flags: <defaults>
</compile_context>

<pallas_src>
import functools

import jax
import jax.numpy as jnp
from jax.experimental import pallas as pl
from jax.experimental.pallas import tpu as pltpu


def _mase_kernel(insample_ref, forecast_ref, target_ref, mask_ref, out_ref,
                 *, freq, batch, use_roll):
    tb, ti = insample_ref.shape

    ins = insample_ref[...].astype(jnp.float32)      # (tb, Ti)
    fc = forecast_ref[...].astype(jnp.float32)       # (tb, To)
    tgt = target_ref[...].astype(jnp.float32)        # (tb, To)
    msk = mask_ref[...].astype(jnp.float32)          # (tb, To)

    # Row-validity mask: the last batch tile may extend past `batch` rows;
    # those rows hold undefined (padded) data and must not contribute.
    row = jax.lax.broadcasted_iota(jnp.int32, (tb, 1), 0)
    row_valid = (pl.program_id(0) * tb + row) < batch          # (tb, 1) bool

    n_diff = ti - freq
    if use_roll:
        # rolled[:, t] = ins[:, (t + freq) % Ti]  -> XLU lane rotate, no
        # materialized misaligned-slice copies; wrap-around lanes masked out.
        rolled = pltpu.roll(ins, shift=ti - freq, axis=1)
        lane = jax.lax.broadcasted_iota(jnp.int32, (tb, ti), 1)
        diff = jnp.where(lane < n_diff, jnp.abs(rolled - ins), 0.0)
    else:
        # Robust fallback for lane-unaligned Ti.
        diff = jnp.abs(ins[:, freq:] - ins[:, :-freq])
    # masep[r] = mean_t |insample[r, t+freq] - insample[r, t]|   -> (tb, 1)
    masep = jnp.sum(diff, axis=1, keepdims=True) * (1.0 / float(n_diff))

    # Per-row numerator: sum_t |target - forecast| * mask        -> (tb, 1)
    num = jnp.sum(jnp.abs(tgt - fc) * msk, axis=1, keepdims=True)

    # divide_no_nan(mask, masep) restructured per row (mask >= 0, masep >= 0):
    #   masep == 0 -> every per-element ratio is NaN (0/0) or +inf -> zeroed
    #   masep  > 0 -> row contribution is num / masep
    # isfinite guard matches the reference when num/masep overflows to +inf.
    pred = row_valid & (masep > 0.0)
    denom = jnp.where(pred, masep, 1.0)              # never generate inf/NaN
    ratio = num / denom
    contrib = jnp.where(pred & jnp.isfinite(ratio), ratio, 0.0)   # (tb, 1)

    partial = jnp.sum(contrib)                                    # scalar f32
    # Lane-dense, (8,128)-aligned partial tile: unmasked full-tile store and
    # no serial accumulator, so the grid axis can be "parallel" (megacore).
    out_ref[...] = jnp.full(out_ref.shape, partial, dtype=out_ref.dtype)


def _vmem_budget_bytes():
    """~75% of physical VMEM for this generation (48 MiB fallback)."""
    try:
        cap = int(pltpu.get_tpu_info().vmem_capacity_bytes)
        return max(32 * 1024 * 1024, (cap * 3) // 4)
    except Exception:
        return 48 * 1024 * 1024     # conservative (v7x-sized) fallback


def _choose_block_rows(batch, ti, to, itemsize, vmem_budget, block_rows=None):
    """Pick a batch tile: as large as the VMEM budget allows (inputs x2
    pipeline buffers + f32 in-kernel temporaries), sublane aligned, but
    capped near ceil(batch/2) so the grid always has >= 2 steps and both
    v7x TensorCores engage on the "parallel" axis."""
    align = 8 if itemsize >= 4 else 16        # sub-32-bit packs 16 sublanes
    if block_rows is not None:
        if block_rows >= batch:
            return batch
        return max(align, (int(block_rows) // align) * align)
    if batch <= align:
        return batch                          # single full block, no padding
    in_row = itemsize * (ti + 3 * to)         # streamed input bytes per row
    f32_row = 4 * (ti + 3 * to)               # live f32 temporaries per row
    per_row = 2 * in_row + 3 * f32_row        # 2 pipeline bufs + temp estimate
    working = max(vmem_budget - (4 << 20), 8 << 20)
    budget_rows = max(align, working // per_row)
    half = -(-batch // 2)                     # ceil(batch / 2)
    half_aligned = max(align, (half // align) * align)
    tb = min(int(budget_rows), half_aligned)
    return max(align, (tb // align) * align)


def mase_loss(insample, freq, forecast, target, mask, *, block_rows=None):
    """Pallas implementation of mase_loss.forward. Returns an f32 scalar."""
    batch, ti = insample.shape
    _, to = forecast.shape
    freq = int(freq)
    if not 0 < freq < ti:
        raise ValueError(f"freq must satisfy 0 < freq < time_i, got freq={freq}, "
                         f"time_i={ti}")

    itemsize = max(insample.dtype.itemsize, forecast.dtype.itemsize,
                   target.dtype.itemsize, mask.dtype.itemsize)
    vmem_budget = _vmem_budget_bytes()
    tb = _choose_block_rows(batch, ti, to, itemsize, vmem_budget, block_rows)
    nb = -(-batch // tb)

    use_roll = (ti % 128 == 0)   # XLU rotate path only for lane-aligned Ti
    kernel = functools.partial(_mase_kernel, freq=freq, batch=batch,
                               use_roll=use_roll)

    # Advisory cost estimate: pure streaming, O(1) flops/byte, no EUP ops.
    bytes_accessed = int(insample.size * insample.dtype.itemsize
                         + forecast.size * forecast.dtype.itemsize
                         + target.size * target.dtype.itemsize
                         + mask.size * mask.dtype.itemsize
                         + nb * 8 * 128 * 4)
    cost = pl.CostEstimate(
        flops=int(4 * batch * (ti + to)),
        transcendentals=0,
        bytes_accessed=bytes_accessed,
    )

    partials = pl.pallas_call(
        kernel,
        grid=(nb,),
        in_specs=[
            pl.BlockSpec((tb, ti), lambda i: (i, 0)),
            pl.BlockSpec((tb, to), lambda i: (i, 0)),
            pl.BlockSpec((tb, to), lambda i: (i, 0)),
            pl.BlockSpec((tb, to), lambda i: (i, 0)),
        ],
        out_specs=pl.BlockSpec((1, 8, 128), lambda i: (i, 0, 0)),
        out_shape=jax.ShapeDtypeStruct((nb, 8, 128), jnp.float32),
        compiler_params=pltpu.CompilerParams(
            dimension_semantics=("parallel",),
            vmem_limit_bytes=int(vmem_budget),
        ),
        cost_estimate=cost,
    )(insample, forecast, target, mask)

    # Tiny final reduction in plain JAX (every tile element equals the block's
    # partial sum; read one lane per block).
    total = jnp.sum(partials[:, 0, 0])
    return total / (batch * to)


def _reference(insample, freq, forecast, target, mask):
    """Pure-JAX reference matching the PyTorch module."""
    masep = jnp.mean(jnp.abs(insample[:, freq:] - insample[:, :-freq]), axis=1)
    ratio = mask / masep[:, None]
    ratio = jnp.where(jnp.isnan(ratio), 0.0, ratio)
    ratio = jnp.where(ratio == jnp.inf, 0.0, ratio)
    return jnp.mean(jnp.abs(target - forecast) * ratio)


if __name__ == "__main__":
    key = jax.random.PRNGKey(0)
    k = jax.random.split(key, 8)

    # Case 1: small unaligned shapes (single block, slice path); row 0 has
    # constant insample so masep == 0 exercises the divide_no_nan path.
    B1, Ti1, To1, f1 = 4, 16, 8, 2
    ins1 = jax.random.normal(k[0], (B1, Ti1), dtype=jnp.float32)
    ins1 = ins1.at[0, :].set(1.5)
    fc1 = jax.random.normal(k[1], (B1, To1), dtype=jnp.float32)
    tg1 = jax.random.normal(k[2], (B1, To1), dtype=jnp.float32)
    mk1 = (jax.random.uniform(k[3], (B1, To1)) > 0.3).astype(jnp.float32)

    out1 = jax.block_until_ready(mase_loss(ins1, f1, fc1, tg1, mk1))
    ref1 = _reference(ins1, f1, fc1, tg1, mk1)
    assert jnp.allclose(out1, ref1, rtol=1e-4, atol=1e-6), (out1, ref1)

    # Case 2: multi-block grid (20 rows, block_rows=8 -> 3 blocks, padded
    # last) with Ti=128 -> pltpu.roll path; OOB-row mask and parallel partial
    # reduction exercised; row 5 again has masep == 0.
    B2, Ti2, To2, f2 = 20, 128, 32, 3
    ins2 = jax.random.normal(k[4], (B2, Ti2), dtype=jnp.float32)
    ins2 = ins2.at[5, :].set(-0.25)
    fc2 = jax.random.normal(k[5], (B2, To2), dtype=jnp.float32)
    tg2 = jax.random.normal(k[6], (B2, To2), dtype=jnp.float32)
    mk2 = (jax.random.uniform(k[7], (B2, To2)) > 0.5).astype(jnp.float32)

    out2 = jax.block_until_ready(mase_loss(ins2, f2, fc2, tg2, mk2, block_rows=8))
    ref2 = _reference(ins2, f2, fc2, tg2, mk2)
    assert jnp.allclose(out2, ref2, rtol=1e-4, atol=1e-6), (out2, ref2)

    # Case 3: bf16 inputs with automatic tiling (16-sublane alignment ->
    # 2 blocks of 16 rows, padded last block); f32 in-kernel accumulation.
    ins3 = ins2.astype(jnp.bfloat16)
    fc3 = fc2.astype(jnp.bfloat16)
    tg3 = tg2.astype(jnp.bfloat16)
    mk3 = mk2.astype(jnp.bfloat16)

    out3 = jax.block_until_ready(mase_loss(ins3, f2, fc3, tg3, mk3))
    ref3 = _reference(ins3.astype(jnp.float32), f2, fc3.astype(jnp.float32),
                      tg3.astype(jnp.float32), mk3.astype(jnp.float32))
    assert jnp.allclose(out3, ref3, rtol=1e-3, atol=1e-5), (out3, ref3)

    print("KERNEL_OK")
</pallas_src>

<mosaic_0001>
module attributes {stable_mosaic.version = 11 : i64} {
  func.func @_mase_kernel(%arg0: i32, %arg1: memref<4x16xf32, #tpu.memory_space<vmem>>, %arg2: memref<4x8xf32, #tpu.memory_space<vmem>>, %arg3: memref<4x8xf32, #tpu.memory_space<vmem>>, %arg4: memref<4x8xf32, #tpu.memory_space<vmem>>, %arg5: memref<1x8x128xf32, #tpu.memory_space<vmem>>) attributes {dimension_semantics = [#tpu.dimension_semantics<parallel>], iteration_bounds = array<i64: 1>, scalar_prefetch = 0 : i64, scratch_operands = 0 : i64, tpu.core_type = #tpu.core_type<tc>, window_params = [{transform_indices = @transform_0, window_bounds = array<i64: 4, 16>}, {transform_indices = @transform_1, window_bounds = array<i64: 4, 8>}, {transform_indices = @transform_2, window_bounds = array<i64: 4, 8>}, {transform_indices = @transform_3, window_bounds = array<i64: 4, 8>}, {transform_indices = @transform_4, window_bounds = array<i64: 1, 8, 128>}]} {
    %c0 = arith.constant 0 : index
    %c0_0 = arith.constant 0 : index
    %0 = vector.load %arg1[%c0, %c0_0] : memref<4x16xf32, #tpu.memory_space<vmem>>, vector<4x16xf32>
    %c0_1 = arith.constant 0 : index
    %c0_2 = arith.constant 0 : index
    %1 = vector.load %arg2[%c0_1, %c0_2] : memref<4x8xf32, #tpu.memory_space<vmem>>, vector<4x8xf32>
    %c0_3 = arith.constant 0 : index
    %c0_4 = arith.constant 0 : index
    %2 = vector.load %arg3[%c0_3, %c0_4] : memref<4x8xf32, #tpu.memory_space<vmem>>, vector<4x8xf32>
    %c0_5 = arith.constant 0 : index
    %c0_6 = arith.constant 0 : index
    %3 = vector.load %arg4[%c0_5, %c0_6] : memref<4x8xf32, #tpu.memory_space<vmem>>, vector<4x8xf32>
    %4 = tpu.iota {dimensions = array<i32: 0>} : vector<4x1xi32>
    %c4_i32 = arith.constant 4 : i32
    %5 = arith.muli %arg0, %c4_i32 : i32
    %6 = vector.broadcast %5 : i32 to vector<4x1xi32>
    %7 = arith.addi %6, %4 : vector<4x1xi32>
    %c4_i32_7 = arith.constant 4 : i32
    %8 = vector.broadcast %c4_i32_7 : i32 to vector<4x1xi32>
    %9 = arith.cmpi slt, %7, %8 : vector<4x1xi32>
    %10 = vector.extract_strided_slice %0 {offsets = [0, 2], sizes = [4, 14], strides = [1, 1]} : vector<4x16xf32> to vector<4x14xf32>
    %11 = vector.extract_strided_slice %0 {offsets = [0, 0], sizes = [4, 14], strides = [1, 1]} : vector<4x16xf32> to vector<4x14xf32>
    %12 = arith.subf %10, %11 : vector<4x14xf32>
    %13 = math.absf %12 : vector<4x14xf32>
    %cst = arith.constant dense<0.000000e+00> : vector<4xf32>
    %14 = vector.multi_reduction <add>, %13, %cst [1] : vector<4x14xf32> to vector<4xf32>
    %15 = vector.shape_cast %14 : vector<4xf32> to vector<4x1xf32>
    %cst_8 = arith.constant 0.0714285746 : f32
    %16 = vector.broadcast %cst_8 : f32 to vector<4x1xf32>
    %17 = arith.mulf %15, %16 : vector<4x1xf32>
    %18 = arith.subf %2, %1 : vector<4x8xf32>
    %19 = math.absf %18 : vector<4x8xf32>
    %20 = arith.mulf %19, %3 : vector<4x8xf32>
    %cst_9 = arith.constant dense<0.000000e+00> : vector<4xf32>
    %21 = vector.multi_reduction <add>, %20, %cst_9 [1] : vector<4x8xf32> to vector<4xf32>
    %22 = vector.shape_cast %21 : vector<4xf32> to vector<4x1xf32>
    %cst_10 = arith.constant 0.000000e+00 : f32
    %23 = vector.broadcast %cst_10 : f32 to vector<4x1xf32>
    %24 = arith.cmpf ogt, %17, %23 : vector<4x1xf32>
    %25 = arith.andi %9, %24 : vector<4x1xi1>
    %cst_11 = arith.constant 1.000000e+00 : f32
    %26 = vector.broadcast %cst_11 : f32 to vector<4x1xf32>
    %27 = arith.select %25, %17, %26 : vector<4x1xi1>, vector<4x1xf32>
    %28 = arith.divf %22, %27 : vector<4x1xf32>
    %29 = tpu.weird %28 : vector<4x1xf32> -> vector<4x1xi1>
    %cst_12 = arith.constant dense<true> : vector<4x1xi1>
    %30 = arith.xori %29, %cst_12 : vector<4x1xi1>
    %31 = arith.andi %25, %30 : vector<4x1xi1>
    %cst_13 = arith.constant 0.000000e+00 : f32
    %32 = vector.broadcast %cst_13 : f32 to vector<4x1xf32>
    %33 = arith.select %31, %28, %32 : vector<4x1xi1>, vector<4x1xf32>
    %34 = vector.shape_cast %33 : vector<4x1xf32> to vector<1x4x1xf32>
    %cst_14 = arith.constant dense<0.000000e+00> : vector<1xf32>
    %35 = vector.multi_reduction <add>, %34, %cst_14 [1, 2] : vector<1x4x1xf32> to vector<1xf32>
    %36 = vector.shape_cast %35 : vector<1xf32> to vector<1x1x1xf32>
    %37 = vector.extract %36[0, 0, 0] : f32 from vector<1x1x1xf32>
    %38 = vector.broadcast %37 : f32 to vector<1x8x128xf32>
    %c0_15 = arith.constant 0 : index
    %c0_16 = arith.constant 0 : index
    %c0_17 = arith.constant 0 : index
    %39 = vector.load %arg5[%c0_15, %c0_16, %c0_17] : memref<1x8x128xf32, #tpu.memory_space<vmem>>, vector<1x8x128xf32>
    tpu.vector_store %arg5[%c0_15, %c0_16, %c0_17], %38 {strides = array<i32>} : memref<1x8x128xf32, #tpu.memory_space<vmem>>, vector<1x8x128xf32>,
    return
  }
  func.func @transform_0(%arg0: i32) -> (i32, i32) {
    %c0_i32 = arith.constant 0 : i32
    %c0_i32_0 = arith.constant 0 : i32
    return %arg0, %c0_i32 : i32, i32
  }
  func.func @transform_1(%arg0: i32) -> (i32, i32) {
    %c0_i32 = arith.constant 0 : i32
    %c0_i32_0 = arith.constant 0 : i32
    return %arg0, %c0_i32 : i32, i32
  }
  func.func @transform_2(%arg0: i32) -> (i32, i32) {
    %c0_i32 = arith.constant 0 : i32
    %c0_i32_0 = arith.constant 0 : i32
    return %arg0, %c0_i32 : i32, i32
  }
  func.func @transform_3(%arg0: i32) -> (i32, i32) {
    %c0_i32 = arith.constant 0 : i32
    %c0_i32_0 = arith.constant 0 : i32
    return %arg0, %c0_i32 : i32, i32
  }
  func.func @transform_4(%arg0: i32) -> (i32, i32, i32) {
    %c0_i32 = arith.constant 0 : i32
    %c0_i32_0 = arith.constant 0 : i32
    %c0_i32_1 = arith.constant 0 : i32
    return %arg0, %c0_i32, %c0_i32_0 : i32, i32, i32
  }
}

</mosaic_0001>

<bundles_post_ra>
// kernel: tpu_custom_call.1
= control target key start
LH: loop header
LB: loop body
LE: loop exit
PB: predicated region body
PF: predicated region fallthrough
CT: control target
= control target key end

     0   :  { %9 = vsyncpa [#allocation3], 0  ;;  %s267_s0 = inlined_call_operand.hbm [shape: f32[4,16], index: 0, kind: input, shape index: {}]   ;;  %s268_s1 = inlined_call_operand.hbm [shape: f32[4,8], index: 1, kind: input, shape index: {}]   ;;  %s269_s2 = inlined_call_operand.hbm [shape: f32[4,8], index: 2, kind: input, shape index: {}]   ;;  %s270_s3 = inlined_call_operand.vmem [shape: f32[4,8], index: 3, kind: input, shape index: {}]   ;;  %s271_s4 = inlined_call_operand.hbm [shape: f32[1,8,128], index: 4, kind: output, shape index: {}]  }
   0x1   :  { %10 = vsyncpa [#allocation6], 0 }
   0x2   :  { %11 = vsyncpa [#allocation4], 0  ;;  %s220_s15 = smov [#allocation5]   ;;  %s221_s17 = smov [#allocation2]  }
   0x3   :  { %s28_s16 = sshll.u32 %s220_s15, 4  ;;  %s18_s18 = sshll.u32 %s221_s17, 4  ;;  %s29_s16 = int_to_ptr.vmem [resolvable:$true] %s28_s16  ;;  %s19_s18 = int_to_ptr.vmem [resolvable:$true] %s18_s18 }
   0x4   :  { %s142_s19 = scalar_lea.vmem %s29_s16, 64  ;;  %p147_p1 = scmp.lt.s32.totalorder %s29_s16, %s29_s16 }
   0x5   :  { %p143_p0 = scmp.ne.s32.totalorder %s29_s16, %s142_s19  ;;  %p148_p2 = scmp.lt.s32.totalorder %s142_s19, %s142_s19 }
   0x7   :  { %p149_p3 = por %p148_p2, %p147_p1 }
   0x9   :  { %p150_p4 = pnand %p149_p3, %p143_p0 }
   0xb   :  { %153 = shalt.err (!%p150_p4)
}
   0xc   :  { %31 = dma.hbm_to_vmem [thread:$0]  %s268_s1, 64, %s29_s16, [#allocation6]  }
   0xd   :  { %s162_s22 = scalar_lea.vmem %s19_s18, 64  ;;  %p167_p6 = scmp.lt.s32.totalorder %s19_s18, %s19_s18 }
   0xe   :  { %p163_p5 = scmp.ne.s32.totalorder %s19_s18, %s162_s22  ;;  %p168_p7 = scmp.lt.s32.totalorder %s162_s22, %s162_s22 }
  0x10   :  { %p169_p8 = por %p168_p7, %p167_p6 }
  0x12   :  { %p170_p9 = pnand %p169_p8, %p163_p5 }
  0x14   :  { %173 = shalt.err (!%p170_p9)
}
  0x15   :  { %21 = dma.hbm_to_vmem [thread:$0]  %s267_s0, 64, %s19_s18, [#allocation3]  }
  0x16   :  { %s222_s25 = smov [#allocation7]  }
  0x17   :  { %s38_s26 = sshll.u32 %s222_s25, 4  ;;  %s39_s26 = int_to_ptr.vmem [resolvable:$true] %s38_s26 }
  0x18   :  { %s182_s27 = scalar_lea.vmem %s39_s26, 64  ;;  %p187_p11 = scmp.lt.s32.totalorder %s39_s26, %s39_s26 }
  0x19   :  { %p183_p10 = scmp.ne.s32.totalorder %s39_s26, %s182_s27  ;;  %p188_p12 = scmp.lt.s32.totalorder %s182_s27, %s182_s27 }
  0x1b   :  { %p189_p13 = por %p188_p12, %p187_p11 }
  0x1d   :  { %p190_p0 = pnand %p189_p13, %p183_p10 }
  0x1f   :  { %193 = shalt.err (!%p190_p0)
}
  0x20   :  { %41 = dma.hbm_to_vmem [thread:$0]  %s269_s2, 64, %s39_s26, [#allocation6]  }
  0x21   :  { %214 = dma.done.wait [#allocation3], 64  }
  0x22   :  { %215 = vsyncadd [#allocation3], 4294967232 }
  0x23   :  { %216 = dma.done.wait [#allocation6], 128  }
  0x24   :  { %217 = vsyncadd [#allocation6], 4294967168  ;;  %v53_v0 = vld [vmem:[#allocation2] sm:$0xf]  ;;  %s223_s0 = smov 2   ;;  %s224_s29 = smov 126   ;;  %v57_v13 = vlaneseq }
  0x25   :  { %64 = vrot.lane.b32.xlu0 %v53_v0, %s223_s0  ;;  %v54_v4 = vld [vmem:[#allocation5] sm:$0xf]  ;;  %v55_v5 = vld [vmem:[#allocation7] sm:$0xf]  ;;  %v56_v8 = vld [vmem:[%s270_s3] sm:$0xf] }
  0x26   :  { %v78_v6 = vsub.f32 %v55_v5, %v54_v4  ;;  %vm73_vm0 = vcmask 109568   ;;  %vm81_vm1 = vcmask 60416   ;;  %v58_v14 = vshrl.u32 %v57_v13, 7  ;;  %s226_s2 = smov [#allocation8]  }
  0x27   :  { %vm225_vm6 = vmmov 1   ;;  %vm94_vm8 = vcmask 3072   ;;  %s113_s3 = sshll.u32 %s226_s2, 4  ;;  %s114_s3 = int_to_ptr.vmem [resolvable:$true] %s113_s3 }
  0x28   :  { %v79_v7 = vand.u32 2147483647, %v78_v6  ;;  %vm62_vm2 = vcmp.lt.s32.totalorder %v58_v14, 4  ;;  %s194_s7 = scalar_lea.vmem %s114_s3, 128  ;;  %p199_p2 = scmp.lt.s32.totalorder %s114_s3, %s114_s3 }
  0x29   :  { %p195_p1 = scmp.ne.s32.totalorder %s114_s3, %s194_s7  ;;  %p200_p3 = scmp.lt.s32.totalorder %s194_s7, %s194_s7 }
  0x2a   :  { %v80_v9 = vmul.f32 %v79_v7, %v56_v8 }
  0x2b   :  { %p201_p4 = por %p200_p3, %p199_p2 }
  0x2c   :  { %v82_v12 = vsel %vm81_vm1, %v80_v9, 0.0 }
  0x2d   :  { %p202_p5 = pnand %p201_p4, %p195_p1 }
  0x97   :  { %v65_v1 = vpop.permute.xlu0 %64 }
  0x98   :  { %v67_v2 = vsub.f32 %v53_v0, %v65_v1 }
  0x9a   :  { %v68_v3 = vand.u32 2147483647, %v67_v2 }
  0x9c   :  { %70 = vrot.lane.b32.xlu0 %v68_v3, %s224_s29 }
 0x10e   :  { %v71_v10 = vpop.permute.xlu0 %70 }
 0x10f   :  { %v74_v11 = vsel %vm73_vm0, %v71_v10, 0.0 }
 0x110   :  { %75 = vadd.xlane.f32.xlu1 %v74_v11 }
 0x114   :  { %83 = vadd.xlane.f32.xlu1 %v82_v12 }
 0x199   :  { %v76_v15 = vpop.xlane.xlu1 %75 }
 0x19a   :  { %v77_v16 = vmul.f32 0.071428575, %v76_v15 }
 0x19c   :  { %vm85_vm3 = vcmp.gt.f32.partialorder %v77_v16, 0.0 }
 0x19d   :  { %vm86_vm4 = vmand %vm62_vm2, %vm85_vm3  ;;  %v84_v18 = vpop.xlane.xlu1 %83 }
 0x19e   :  { %v87_v17 = vsel %vm86_vm4, %v77_v16, 1.0 }
 0x19f   :  { %132 = vrcp.f32 %v87_v17 }
 0x1ac   :  { %v133_v19 = vpop.eup %132 }
 0x1ad   :  { %v89_v20 = vmul.f32 %v133_v19, %v84_v18 }
 0x1af   :  { %vm90_vm5 = vweird.f32 %v89_v20 }
 0x1b0   :  { %vm91_vm7 = vmxor %vm90_vm5, %vm225_vm6 }
 0x1b1   :  { %vm92_vm9 = vmand %vm86_vm4, %vm91_vm7 }
 0x1b2   :  { %v93_v21 = vsel %vm92_vm9, %v89_v20, 0.0 }
 0x1b3   :  { %v95_v22 = vsel %vm94_vm8, %v93_v21, 0.0 }
 0x1b4   :  { %96 = vadd.xlane.f32.xlu0 %v95_v22 }
 0x23d   :  { %v97_v23 = vpop.xlane.xlu0 %96 }
 0x23e   :  { %v98_v24 = vrot.slane %v97_v23, 4 }
 0x240   :  { %v99_v25 = vadd.f32 %v98_v24, %v97_v23 }
 0x242   :  { %v100_v26 = vrot.slane %v99_v25, 2 }
 0x244   :  { %v101_v27 = vadd.f32 %v100_v26, %v99_v25 }
 0x246   :  { %v102_v28 = vrot.slane %v101_v27, 1 }
 0x248   :  { %v103_v29 = vadd.f32 %v102_v28, %v101_v27 }
 0x24a   :  { %123 = vpush %v103_v29 }
 0x27b   :  { %s124_s6 = spop %123 }
 0x27c   :  { %v105_v30 = vstv %s124_s6 }
 0x27d   :  { %106 = vst [vmem:[#allocation8] sm:$0xff] %v105_v30 }
 0x27e   :  { %205 = shalt.err (!%p202_p5)
}
 0x27f   :  { %116 = dma.vmem_to_hbm [thread:$0]  %s114_s3, 128, %s271_s4, [#allocation4]  }
 0x280   :  { %218 = dma.done.wait [#allocation4], 128  }
 0x281   :  { %219 = vsyncadd [#allocation4], 4294967168 }
 0x282   :  { %120 = vsyncpa [#allocation3], 1 }
 0x283   :  { %121 = vsyncpa [#allocation6], 1 }
 0x284   :  { %122 = vsyncpa [#allocation4], 1 }

</bundles_post_ra>
